<compile_context>
chip_gen: v6e
topology: v6e:2x2x1
jax: 0.10.0
libtpu: 0.0.40
codegen_flags: <defaults>
</compile_context>

<pallas_src>
import jax
import jax.numpy as jnp
from jax.experimental import pallas as pl
from jax.experimental.pallas import tpu as pltpu

_SLOPE = 0.3  # nn.LeakyReLU(0.3) — explicit in the source module.


def _leaky_relu(v):
    return jnp.where(v > 0, v, _SLOPE * v)


def vae_kernel(x_ref, eps_ref, w_ref, b_ref, dec_ref, lat_ref):
    """Entire VAE forward, everything resident in VMEM.

    x_ref   : [B, P]      input        (first input_dim lanes real, rest 0)
    eps_ref : [B, P]      N(0,1) noise (first latent_dim lanes real, rest 0)
    w_ref   : [7, P, P]   zero-padded weights:
                          [enc1, enc2, enc3_mu, enc3_logvar, dec1, dec2, dec3]
    b_ref   : [7, 1, P]   zero-padded biases (same order)
    dec_ref : [B, P]      sigmoid(decoder) output
    lat_ref : [3, B, P]   packed {mu, log_var, z}
    """
    x = x_ref[...]

    def dense(h, i):  # i is a static Python int -> static leading-axis views
        return jnp.dot(h, w_ref[i], preferred_element_type=jnp.float32) + b_ref[i]

    # ---- encoder: Linear -> LeakyReLU(0.3) -> Linear -> LeakyReLU(0.3) -> Linear
    h = _leaky_relu(dense(x, 0))
    h = _leaky_relu(dense(h, 1))
    mu = dense(h, 2)        # padded lanes are exactly 0
    log_var = dense(h, 3)   # padded lanes are exactly 0

    # ---- reparameterize: z = mu + eps * exp(0.5 * log_var)
    z = mu + eps_ref[...] * jnp.exp(0.5 * log_var)

    # ---- decoder: Linear -> LeakyReLU(0.3) -> Linear -> LeakyReLU(0.3) -> Linear -> Sigmoid
    d = _leaky_relu(dense(z, 4))
    d = _leaky_relu(dense(d, 5))
    d = dense(d, 6)

    # sigmoid via EUP exp + EUP approximate reciprocal (off the VALU path)
    dec_ref[...] = pl.reciprocal(1.0 + jnp.exp(-d), approx=True)

    # packed latent outputs (single output DMA)
    lat_ref[0] = mu
    lat_ref[1] = log_var
    lat_ref[2] = z


def _round_up(n, m):
    return ((n + m - 1) // m) * m


def pack_params(params, latent_dim):
    """Pack 6 (W, b) pairs into one weight slab [7, P, P] and one bias slab
    [7, 1, P]; the encoder's last layer is split into mu / log_var halves so
    the kernel never has to slice at lane offset `latent_dim`."""
    (w1, b1, w2, b2, w3, b3, w4, b4, w5, b5, w6, b6) = params
    pieces = [
        (w1, b1),
        (w2, b2),
        (w3[:, :latent_dim], b3[:, :latent_dim]),   # mu head
        (w3[:, latent_dim:], b3[:, latent_dim:]),   # log_var head
        (w4, b4),
        (w5, b5),
        (w6, b6),
    ]
    max_dim = max(max(w.shape) for w, _ in pieces)
    pad = _round_up(max_dim, 8)

    w_slab = jnp.zeros((len(pieces), pad, pad), jnp.float32)
    b_slab = jnp.zeros((len(pieces), 1, pad), jnp.float32)
    for i, (w, b) in enumerate(pieces):
        fi, fo = w.shape
        w_slab = w_slab.at[i, :fi, :fo].set(w)
        b_slab = b_slab.at[i, :1, :fo].set(b.reshape(1, fo))
    return w_slab, b_slab


def vae_forward(x, eps, w_slab, b_slab):
    """x: [B, input_dim] f32, eps: [B, latent_dim] f32 (i.i.d. N(0,1))."""
    B, input_dim = x.shape
    latent_dim = eps.shape[1]
    P = w_slab.shape[-1]
    n_layers = w_slab.shape[0]

    x_pad = jnp.pad(x, ((0, 0), (0, P - input_dim)))
    eps_pad = jnp.pad(eps, ((0, 0), (0, P - latent_dim)))

    vmem = pl.BlockSpec(memory_space=pltpu.MemorySpace.VMEM)

    cost = pl.CostEstimate(
        flops=2 * B * P * P * n_layers,
        transcendentals=3 * B * P,                       # exp(std), exp(-d), approx rcp
        bytes_accessed=4 * (x_pad.size + eps_pad.size + w_slab.size
                            + b_slab.size + B * P + 3 * B * P),
    )

    dec_pad, lat = pl.pallas_call(
        vae_kernel,
        out_shape=(
            jax.ShapeDtypeStruct((B, P), jnp.float32),     # decoder output (padded)
            jax.ShapeDtypeStruct((3, B, P), jnp.float32),  # packed mu / log_var / z
        ),
        in_specs=[vmem, vmem, vmem, vmem],
        out_specs=(vmem, vmem),
        cost_estimate=cost,
    )(x_pad, eps_pad, w_slab, b_slab)

    dec = dec_pad[:, :input_dim]
    mu = lat[0, :, :latent_dim]
    log_var = lat[1, :, :latent_dim]
    z = lat[2, :, :latent_dim]
    return dec, mu, log_var, z


def init_params(key, input_dim, hidden_dim, latent_dim):
    """Deterministic init. Weights stored as [in, out]; biases as [1, out]."""
    dims = [
        (input_dim, hidden_dim),            # enc L1
        (hidden_dim, hidden_dim // 2),      # enc L2
        (hidden_dim // 2, latent_dim * 2),  # enc L3 (mu | log_var)
        (latent_dim, hidden_dim // 2),      # dec L1
        (hidden_dim // 2, hidden_dim),      # dec L2
        (hidden_dim, input_dim),            # dec L3
    ]
    params = []
    for (fan_in, fan_out) in dims:
        key, kw, kb = jax.random.split(key, 3)
        bound = 1.0 / jnp.sqrt(fan_in)
        w = jax.random.uniform(kw, (fan_in, fan_out), jnp.float32, -bound, bound)
        b = jax.random.uniform(kb, (1, fan_out), jnp.float32, -bound, bound)
        params += [w, b]
    return tuple(params)


def vae_reference(x, eps, params):
    """Pure-JAX reference (unpacked params) for correctness checking."""
    (w1, b1, w2, b2, w3, b3, w4, b4, w5, b5, w6, b6) = params
    latent_dim = eps.shape[1]
    h = _leaky_relu(x @ w1 + b1)
    h = _leaky_relu(h @ w2 + b2)
    enc = h @ w3 + b3
    mu, log_var = enc[:, :latent_dim], enc[:, latent_dim:]
    z = mu + eps * jnp.exp(0.5 * log_var)
    d = _leaky_relu(z @ w4 + b4)
    d = _leaky_relu(d @ w5 + b5)
    dec = jax.nn.sigmoid(d @ w6 + b6)
    return dec, mu, log_var, z


if __name__ == "__main__":
    # Small shapes consistent with the module's forward.
    batch = 8
    input_dim = 64
    hidden_dim = 32
    latent_dim = 8

    key = jax.random.PRNGKey(0)
    key, kx, keps, kp = jax.random.split(key, 4)
    x = jax.random.uniform(kx, (batch, input_dim), jnp.float32)       # data-like input
    eps = jax.random.normal(keps, (batch, latent_dim), jnp.float32)   # reparam noise
    params = init_params(kp, input_dim, hidden_dim, latent_dim)
    w_slab, b_slab = pack_params(params, latent_dim)

    dec_out, mu, log_var, z = jax.block_until_ready(
        vae_forward(x, eps, w_slab, b_slab))

    # sanity check against pure-JAX reference
    ref_dec, ref_mu, ref_lv, ref_z = vae_reference(x, eps, params)
    assert dec_out.shape == ref_dec.shape and mu.shape == ref_mu.shape
    assert z.shape == ref_z.shape and log_var.shape == ref_lv.shape
    assert float(jnp.max(jnp.abs(mu - ref_mu))) < 1e-5
    assert float(jnp.max(jnp.abs(log_var - ref_lv))) < 1e-5
    assert float(jnp.max(jnp.abs(z - ref_z))) < 1e-5
    # decoder output uses the EUP approximate reciprocal (~2^-12 rel. error),
    # so compare with a correspondingly looser (still bug-catching) tolerance.
    assert float(jnp.max(jnp.abs(dec_out - ref_dec))) < 1e-2

    print("KERNEL_OK")
</pallas_src>

<mosaic_0001>
module attributes {stable_mosaic.version = 11 : i64} {
  func.func @vae_kernel(%arg0: memref<8x64xf32, #tpu.memory_space<vmem>>, %arg1: memref<8x64xf32, #tpu.memory_space<vmem>>, %arg2: memref<7x64x64xf32, #tpu.memory_space<vmem>>, %arg3: memref<7x1x64xf32, #tpu.memory_space<vmem>>, %arg4: memref<8x64xf32, #tpu.memory_space<vmem>>, %arg5: memref<3x8x64xf32, #tpu.memory_space<vmem>>) attributes {dimension_semantics = [], scalar_prefetch = 0 : i64, scratch_operands = 0 : i64, tpu.core_type = #tpu.core_type<tc>} {
    %c0 = arith.constant 0 : index
    %c0_0 = arith.constant 0 : index
    %0 = vector.load %arg0[%c0, %c0_0] : memref<8x64xf32, #tpu.memory_space<vmem>>, vector<8x64xf32>
    %c0_1 = arith.constant 0 : index
    %c0_2 = arith.constant 0 : index
    %c0_3 = arith.constant 0 : index
    %1 = vector.load %arg2[%c0_1, %c0_2, %c0_3] : memref<7x64x64xf32, #tpu.memory_space<vmem>>, vector<1x64x64xf32>
    %2 = vector.shape_cast %1 : vector<1x64x64xf32> to vector<64x64xf32>
    %cst = arith.constant dense<0.000000e+00> : vector<8x64xf32>
    %3 = tpu.matmul %0, %2, %cst {dimension_numbers = #tpu.dot_dimension_numbers<[1], [0], [0], [1], [0, 0, 1, 1], [], []>} : vector<8x64xf32>, vector<64x64xf32>, vector<8x64xf32> -> vector<8x64xf32>
    %c0_4 = arith.constant 0 : index
    %c0_5 = arith.constant 0 : index
    %c0_6 = arith.constant 0 : index
    %4 = vector.load %arg3[%c0_4, %c0_5, %c0_6] : memref<7x1x64xf32, #tpu.memory_space<vmem>>, vector<1x1x64xf32>
    %5 = vector.shape_cast %4 : vector<1x1x64xf32> to vector<1x64xf32>
    %6 = vector.broadcast %5 : vector<1x64xf32> to vector<8x64xf32>
    %7 = arith.addf %3, %6 : vector<8x64xf32>
    %cst_7 = arith.constant 0.000000e+00 : f32
    %8 = vector.broadcast %cst_7 : f32 to vector<8x64xf32>
    %9 = arith.cmpf ogt, %7, %8 : vector<8x64xf32>
    %cst_8 = arith.constant 3.000000e-01 : f32
    %10 = vector.broadcast %cst_8 : f32 to vector<8x64xf32>
    %11 = arith.mulf %10, %7 : vector<8x64xf32>
    %12 = arith.select %9, %7, %11 : vector<8x64xi1>, vector<8x64xf32>
    %c1 = arith.constant 1 : index
    %c0_9 = arith.constant 0 : index
    %c0_10 = arith.constant 0 : index
    %13 = vector.load %arg2[%c1, %c0_9, %c0_10] : memref<7x64x64xf32, #tpu.memory_space<vmem>>, vector<1x64x64xf32>
    %14 = vector.shape_cast %13 : vector<1x64x64xf32> to vector<64x64xf32>
    %cst_11 = arith.constant dense<0.000000e+00> : vector<8x64xf32>
    %15 = tpu.matmul %12, %14, %cst_11 {dimension_numbers = #tpu.dot_dimension_numbers<[1], [0], [0], [1], [0, 0, 1, 1], [], []>} : vector<8x64xf32>, vector<64x64xf32>, vector<8x64xf32> -> vector<8x64xf32>
    %c1_12 = arith.constant 1 : index
    %c0_13 = arith.constant 0 : index
    %c0_14 = arith.constant 0 : index
    %16 = vector.load %arg3[%c1_12, %c0_13, %c0_14] : memref<7x1x64xf32, #tpu.memory_space<vmem>>, vector<1x1x64xf32>
    %17 = vector.shape_cast %16 : vector<1x1x64xf32> to vector<1x64xf32>
    %18 = vector.broadcast %17 : vector<1x64xf32> to vector<8x64xf32>
    %19 = arith.addf %15, %18 : vector<8x64xf32>
    %cst_15 = arith.constant 0.000000e+00 : f32
    %20 = vector.broadcast %cst_15 : f32 to vector<8x64xf32>
    %21 = arith.cmpf ogt, %19, %20 : vector<8x64xf32>
    %cst_16 = arith.constant 3.000000e-01 : f32
    %22 = vector.broadcast %cst_16 : f32 to vector<8x64xf32>
    %23 = arith.mulf %22, %19 : vector<8x64xf32>
    %24 = arith.select %21, %19, %23 : vector<8x64xi1>, vector<8x64xf32>
    %c2 = arith.constant 2 : index
    %c0_17 = arith.constant 0 : index
    %c0_18 = arith.constant 0 : index
    %25 = vector.load %arg2[%c2, %c0_17, %c0_18] : memref<7x64x64xf32, #tpu.memory_space<vmem>>, vector<1x64x64xf32>
    %26 = vector.shape_cast %25 : vector<1x64x64xf32> to vector<64x64xf32>
    %cst_19 = arith.constant dense<0.000000e+00> : vector<8x64xf32>
    %27 = tpu.matmul %24, %26, %cst_19 {dimension_numbers = #tpu.dot_dimension_numbers<[1], [0], [0], [1], [0, 0, 1, 1], [], []>} : vector<8x64xf32>, vector<64x64xf32>, vector<8x64xf32> -> vector<8x64xf32>
    %c2_20 = arith.constant 2 : index
    %c0_21 = arith.constant 0 : index
    %c0_22 = arith.constant 0 : index
    %28 = vector.load %arg3[%c2_20, %c0_21, %c0_22] : memref<7x1x64xf32, #tpu.memory_space<vmem>>, vector<1x1x64xf32>
    %29 = vector.shape_cast %28 : vector<1x1x64xf32> to vector<1x64xf32>
    %30 = vector.broadcast %29 : vector<1x64xf32> to vector<8x64xf32>
    %31 = arith.addf %27, %30 : vector<8x64xf32>
    %c3 = arith.constant 3 : index
    %c0_23 = arith.constant 0 : index
    %c0_24 = arith.constant 0 : index
    %32 = vector.load %arg2[%c3, %c0_23, %c0_24] : memref<7x64x64xf32, #tpu.memory_space<vmem>>, vector<1x64x64xf32>
    %33 = vector.shape_cast %32 : vector<1x64x64xf32> to vector<64x64xf32>
    %cst_25 = arith.constant dense<0.000000e+00> : vector<8x64xf32>
    %34 = tpu.matmul %24, %33, %cst_25 {dimension_numbers = #tpu.dot_dimension_numbers<[1], [0], [0], [1], [0, 0, 1, 1], [], []>} : vector<8x64xf32>, vector<64x64xf32>, vector<8x64xf32> -> vector<8x64xf32>
    %c3_26 = arith.constant 3 : index
    %c0_27 = arith.constant 0 : index
    %c0_28 = arith.constant 0 : index
    %35 = vector.load %arg3[%c3_26, %c0_27, %c0_28] : memref<7x1x64xf32, #tpu.memory_space<vmem>>, vector<1x1x64xf32>
    %36 = vector.shape_cast %35 : vector<1x1x64xf32> to vector<1x64xf32>
    %37 = vector.broadcast %36 : vector<1x64xf32> to vector<8x64xf32>
    %38 = arith.addf %34, %37 : vector<8x64xf32>
    %c0_29 = arith.constant 0 : index
    %c0_30 = arith.constant 0 : index
    %39 = vector.load %arg1[%c0_29, %c0_30] : memref<8x64xf32, #tpu.memory_space<vmem>>, vector<8x64xf32>
    %cst_31 = arith.constant 5.000000e-01 : f32
    %40 = vector.broadcast %cst_31 : f32 to vector<8x64xf32>
    %41 = arith.mulf %40, %38 : vector<8x64xf32>
    %42 = math.exp %41 : vector<8x64xf32>
    %43 = arith.mulf %39, %42 : vector<8x64xf32>
    %44 = arith.addf %31, %43 : vector<8x64xf32>
    %c4 = arith.constant 4 : index
    %c0_32 = arith.constant 0 : index
    %c0_33 = arith.constant 0 : index
    %45 = vector.load %arg2[%c4, %c0_32, %c0_33] : memref<7x64x64xf32, #tpu.memory_space<vmem>>, vector<1x64x64xf32>
    %46 = vector.shape_cast %45 : vector<1x64x64xf32> to vector<64x64xf32>
    %cst_34 = arith.constant dense<0.000000e+00> : vector<8x64xf32>
    %47 = tpu.matmul %44, %46, %cst_34 {dimension_numbers = #tpu.dot_dimension_numbers<[1], [0], [0], [1], [0, 0, 1, 1], [], []>} : vector<8x64xf32>, vector<64x64xf32>, vector<8x64xf32> -> vector<8x64xf32>
    %c4_35 = arith.constant 4 : index
    %c0_36 = arith.constant 0 : index
    %c0_37 = arith.constant 0 : index
    %48 = vector.load %arg3[%c4_35, %c0_36, %c0_37] : memref<7x1x64xf32, #tpu.memory_space<vmem>>, vector<1x1x64xf32>
    %49 = vector.shape_cast %48 : vector<1x1x64xf32> to vector<1x64xf32>
    %50 = vector.broadcast %49 : vector<1x64xf32> to vector<8x64xf32>
    %51 = arith.addf %47, %50 : vector<8x64xf32>
    %cst_38 = arith.constant 0.000000e+00 : f32
    %52 = vector.broadcast %cst_38 : f32 to vector<8x64xf32>
    %53 = arith.cmpf ogt, %51, %52 : vector<8x64xf32>
    %cst_39 = arith.constant 3.000000e-01 : f32
    %54 = vector.broadcast %cst_39 : f32 to vector<8x64xf32>
    %55 = arith.mulf %54, %51 : vector<8x64xf32>
    %56 = arith.select %53, %51, %55 : vector<8x64xi1>, vector<8x64xf32>
    %c5 = arith.constant 5 : index
    %c0_40 = arith.constant 0 : index
    %c0_41 = arith.constant 0 : index
    %57 = vector.load %arg2[%c5, %c0_40, %c0_41] : memref<7x64x64xf32, #tpu.memory_space<vmem>>, vector<1x64x64xf32>
    %58 = vector.shape_cast %57 : vector<1x64x64xf32> to vector<64x64xf32>
    %cst_42 = arith.constant dense<0.000000e+00> : vector<8x64xf32>
    %59 = tpu.matmul %56, %58, %cst_42 {dimension_numbers = #tpu.dot_dimension_numbers<[1], [0], [0], [1], [0, 0, 1, 1], [], []>} : vector<8x64xf32>, vector<64x64xf32>, vector<8x64xf32> -> vector<8x64xf32>
    %c5_43 = arith.constant 5 : index
    %c0_44 = arith.constant 0 : index
    %c0_45 = arith.constant 0 : index
    %60 = vector.load %arg3[%c5_43, %c0_44, %c0_45] : memref<7x1x64xf32, #tpu.memory_space<vmem>>, vector<1x1x64xf32>
    %61 = vector.shape_cast %60 : vector<1x1x64xf32> to vector<1x64xf32>
    %62 = vector.broadcast %61 : vector<1x64xf32> to vector<8x64xf32>
    %63 = arith.addf %59, %62 : vector<8x64xf32>
    %cst_46 = arith.constant 0.000000e+00 : f32
    %64 = vector.broadcast %cst_46 : f32 to vector<8x64xf32>
    %65 = arith.cmpf ogt, %63, %64 : vector<8x64xf32>
    %cst_47 = arith.constant 3.000000e-01 : f32
    %66 = vector.broadcast %cst_47 : f32 to vector<8x64xf32>
    %67 = arith.mulf %66, %63 : vector<8x64xf32>
    %68 = arith.select %65, %63, %67 : vector<8x64xi1>, vector<8x64xf32>
    %c6 = arith.constant 6 : index
    %c0_48 = arith.constant 0 : index
    %c0_49 = arith.constant 0 : index
    %69 = vector.load %arg2[%c6, %c0_48, %c0_49] : memref<7x64x64xf32, #tpu.memory_space<vmem>>, vector<1x64x64xf32>
    %70 = vector.shape_cast %69 : vector<1x64x64xf32> to vector<64x64xf32>
    %cst_50 = arith.constant dense<0.000000e+00> : vector<8x64xf32>
    %71 = tpu.matmul %68, %70, %cst_50 {dimension_numbers = #tpu.dot_dimension_numbers<[1], [0], [0], [1], [0, 0, 1, 1], [], []>} : vector<8x64xf32>, vector<64x64xf32>, vector<8x64xf32> -> vector<8x64xf32>
    %c6_51 = arith.constant 6 : index
    %c0_52 = arith.constant 0 : index
    %c0_53 = arith.constant 0 : index
    %72 = vector.load %arg3[%c6_51, %c0_52, %c0_53] : memref<7x1x64xf32, #tpu.memory_space<vmem>>, vector<1x1x64xf32>
    %73 = vector.shape_cast %72 : vector<1x1x64xf32> to vector<1x64xf32>
    %74 = vector.broadcast %73 : vector<1x64xf32> to vector<8x64xf32>
    %75 = arith.addf %71, %74 : vector<8x64xf32>
    %cst_54 = arith.constant 0.000000e+00 : f32
    %76 = vector.broadcast %cst_54 : f32 to vector<8x64xf32>
    %77 = arith.subf %76, %75 : vector<8x64xf32>
    %78 = math.exp %77 : vector<8x64xf32>
    %cst_55 = arith.constant 1.000000e+00 : f32
    %79 = vector.broadcast %cst_55 : f32 to vector<8x64xf32>
    %80 = arith.addf %79, %78 : vector<8x64xf32>
    %81 = tpu.reciprocal %80 {approx = true} : vector<8x64xf32> -> vector<8x64xf32>
    %c0_56 = arith.constant 0 : index
    %c0_57 = arith.constant 0 : index
    %82 = vector.load %arg4[%c0_56, %c0_57] : memref<8x64xf32, #tpu.memory_space<vmem>>, vector<8x64xf32>
    tpu.vector_store %arg4[%c0_56, %c0_57], %81 {strides = array<i32>} : memref<8x64xf32, #tpu.memory_space<vmem>>, vector<8x64xf32>,
    %c0_58 = arith.constant 0 : index
    %c0_59 = arith.constant 0 : index
    %c0_60 = arith.constant 0 : index
    %83 = vector.load %arg5[%c0_58, %c0_59, %c0_60] : memref<3x8x64xf32, #tpu.memory_space<vmem>>, vector<1x8x64xf32>
    %84 = vector.shape_cast %83 : vector<1x8x64xf32> to vector<8x64xf32>
    %85 = vector.shape_cast %31 : vector<8x64xf32> to vector<1x8x64xf32>
    tpu.vector_store %arg5[%c0_58, %c0_59, %c0_60], %85 {strides = array<i32>} : memref<3x8x64xf32, #tpu.memory_space<vmem>>, vector<1x8x64xf32>,
    %c1_61 = arith.constant 1 : index
    %c0_62 = arith.constant 0 : index
    %c0_63 = arith.constant 0 : index
    %86 = vector.load %arg5[%c1_61, %c0_62, %c0_63] : memref<3x8x64xf32, #tpu.memory_space<vmem>>, vector<1x8x64xf32>
    %87 = vector.shape_cast %86 : vector<1x8x64xf32> to vector<8x64xf32>
    %88 = vector.shape_cast %38 : vector<8x64xf32> to vector<1x8x64xf32>
    tpu.vector_store %arg5[%c1_61, %c0_62, %c0_63], %88 {strides = array<i32>} : memref<3x8x64xf32, #tpu.memory_space<vmem>>, vector<1x8x64xf32>,
    %c2_64 = arith.constant 2 : index
    %c0_65 = arith.constant 0 : index
    %c0_66 = arith.constant 0 : index
    %89 = vector.load %arg5[%c2_64, %c0_65, %c0_66] : memref<3x8x64xf32, #tpu.memory_space<vmem>>, vector<1x8x64xf32>
    %90 = vector.shape_cast %89 : vector<1x8x64xf32> to vector<8x64xf32>
    %91 = vector.shape_cast %44 : vector<8x64xf32> to vector<1x8x64xf32>
    tpu.vector_store %arg5[%c2_64, %c0_65, %c0_66], %91 {strides = array<i32>} : memref<3x8x64xf32, #tpu.memory_space<vmem>>, vector<1x8x64xf32>,
    return
  }
}

</mosaic_0001>

<bundles_post_ra>
// kernel: tpu_custom_call.1
= control target key start
LH: loop header
LB: loop body
LE: loop exit
PB: predicated region body
PF: predicated region fallthrough
CT: control target
= control target key end

     0   :  { %11 = vsyncpa [#allocation3], 0  ;;  %s1266_s0 = inlined_call_operand.hbm [shape: f32[8,64], index: 0, kind: input, shape index: {}]   ;;  %s1267_s1 = inlined_call_operand.hbm [shape: f32[8,64], index: 1, kind: input, shape index: {}]   ;;  %s1268_s2 = inlined_call_operand.hbm [shape: f32[7,64,64], index: 2, kind: input, shape index: {}]   ;;  %s1269_s3 = inlined_call_operand.hbm [shape: f32[7,1,64], index: 3, kind: input, shape index: {}]   ;;  %s1270_s4 = inlined_call_operand.hbm [shape: f32[8,64], index: 4, kind: output, shape index: {0}]   ;;  %s1271_s5 = inlined_call_operand.hbm [shape: f32[3,8,64], index: 5, kind: output, shape index: {1}]  }
   0x1   :  { %12 = vsyncpa [#allocation6], 0 }
   0x2   :  { %13 = vsyncpa [#allocation9], 0 }
   0x3   :  { %14 = vsyncpa [#allocation4], 0 }
   0x4   :  { %15 = vsyncpa [#allocation12], 0  ;;  %s1119_s18 = smov [#allocation5]   ;;  %s1120_s20 = smov [#allocation2]  }
   0x5   :  { %s32_s19 = sshll.u32 %s1119_s18, 4  ;;  %s22_s21 = sshll.u32 %s1120_s20, 4  ;;  %s33_s19 = int_to_ptr.vmem [resolvable:$true] %s32_s19  ;;  %s23_s21 = int_to_ptr.vmem [resolvable:$true] %s22_s21 }
   0x6   :  { %s997_s22 = scalar_lea.vmem %s33_s19, 128  ;;  %p1002_p1 = scmp.lt.s32.totalorder %s33_s19, %s33_s19 }
   0x7   :  { %p998_p0 = scmp.ne.s32.totalorder %s33_s19, %s997_s22  ;;  %p1003_p2 = scmp.lt.s32.totalorder %s997_s22, %s997_s22 }
   0x9   :  { %p1004_p3 = por %p1003_p2, %p1002_p1 }
   0xb   :  { %p1005_p4 = pnand %p1004_p3, %p998_p0 }
   0xd   :  { %1008 = shalt.err (!%p1005_p4)
}
   0xe   :  { %35 = dma.hbm_to_vmem [thread:$0]  %s1267_s1, 128, %s33_s19, [#allocation6]  }
   0xf   :  { %s1017_s25 = scalar_lea.vmem %s23_s21, 128  ;;  %p1022_p6 = scmp.lt.s32.totalorder %s23_s21, %s23_s21 }
  0x10   :  { %p1018_p5 = scmp.ne.s32.totalorder %s23_s21, %s1017_s25  ;;  %p1023_p7 = scmp.lt.s32.totalorder %s1017_s25, %s1017_s25 }
  0x12   :  { %p1024_p8 = por %p1023_p7, %p1022_p6 }
  0x14   :  { %p1025_p9 = pnand %p1024_p8, %p1018_p5 }
  0x16   :  { %1028 = shalt.err (!%p1025_p9)
}
  0x17   :  { %25 = dma.hbm_to_vmem [thread:$0]  %s1266_s0, 128, %s23_s21, [#allocation3]  }
  0x18   :  { %s1121_s28 = smov [#allocation7]  }
  0x19   :  { %s41_s29 = sshll.u32 %s1121_s28, 4  ;;  %s42_s29 = int_to_ptr.vmem [resolvable:$true] %s41_s29 }
  0x1a   :  { %s1037_s30 = scalar_lea.vmem %s42_s29, 7168  ;;  %p1042_p11 = scmp.lt.s32.totalorder %s42_s29, %s42_s29 }
  0x1b   :  { %p1038_p10 = scmp.ne.s32.totalorder %s42_s29, %s1037_s30  ;;  %p1043_p12 = scmp.lt.s32.totalorder %s1037_s30, %s1037_s30 }
  0x1d   :  { %p1044_p13 = por %p1043_p12, %p1042_p11 }
  0x1f   :  { %p1045_p0 = pnand %p1044_p13, %p1038_p10 }
  0x21   :  { %1048 = shalt.err (!%p1045_p0)
}
  0x22   :  { %s1122_s1 = smov 128   ;;  %s1123_s6 = smov 8  }
  0x23   :  { %47 = dma.hbm_to_vmem [thread:$0]  %s1268_s2, 7168, %s42_s29, [#allocation6], %s1122_s1, %s1122_s1, %s1123_s6  }
  0x24   :  { %s1124_s0 = smov [#allocation8]  }
  0x25   :  { %s53_s9 = sshll.u32 %s1124_s0, 4  ;;  %s54_s9 = int_to_ptr.vmem [resolvable:$true] %s53_s9 }
  0x26   :  { %s1057_s10 = scalar_lea.vmem %s54_s9, 112  ;;  %s1061_s11 = scalar_lea.vmem %s54_s9, 128 }
  0x27   :  { %p1058_p1 = scmp.ne.s32.totalorder %s54_s9, %s1057_s10  ;;  %p1062_p2 = scmp.lt.s32.totalorder %s54_s9, %s54_s9 }
  0x28   :  { %p1063_p3 = scmp.lt.s32.totalorder %s1061_s11, %s1057_s10 }
  0x2a   :  { %p1064_p4 = por %p1063_p3, %p1062_p2 }
  0x2c   :  { %p1065_p5 = pnand %p1064_p4, %p1058_p1 }
  0x2e   :  { %1068 = shalt.err (!%p1065_p5)
}
  0x2f   :  { %s1125_s12 = smov 16   ;;  %s1126_s13 = smov 1  }
  0x30   :  { %59 = dma.hbm_to_vmem [thread:$0]  %s1269_s3, 112, %s54_s9, [#allocation9], %s1125_s12, %s1125_s12, %s1126_s13  }
  0x31   :  { %1109 = dma.done.wait [#allocation3], 128  }
  0x32   :  { %1110 = vsyncadd [#allocation3], 4294967168 }
  0x33   :  { %1111 = dma.done.wait [#allocation6], 7296  }
  0x34   :  { %1112 = vsyncadd [#allocation6], 4294960000 }
  0x35   :  { %1113 = dma.done.wait [#allocation9], 112  }
  0x36   :  { %1114 = vsyncadd [#allocation9], 4294967184  ;;  %v1127_v0 = vmov 0.0   ;;  %vm1128_vm0 = vmmov 0   ;;  %v80_v1 = vld [vmem:[#allocation7 + $0x38] sm:$0xff]  ;;  %v79_v2 = vld [vmem:[#allocation7 + $0x30] sm:$0xff] }
  0x37   :  { %838 = vmatprep.subr.mxu0 %v1127_v0  ;;  %854 = vmatprep.mubr.msk.f32.mxu0 %vm1128_vm0, %v1127_v0  ;;  %v78_v3 = vld [vmem:[#allocation7 + $0x28] sm:$0xff]  ;;  %v173_v4 = vld [vmem:[#allocation7 + $0x78] sm:$0xff]  ;;  %v172_v5 = vld [vmem:[#allocation7 + $0x70] sm:$0xff]  ;;  %vm88_vm1 = vcmask 523264   ;;  %s1129_s2 = smov [#allocation11]  }
  0x38   :  { %857 = vmatprep.subr.mxu1 %v1127_v0  ;;  %873 = vmatprep.mubr.msk.f32.mxu1 %vm1128_vm0, %v1127_v0  ;;  %v77_v6 = vld [vmem:[#allocation7 + $0x20] sm:$0xff]  ;;  %v171_v7 = vld [vmem:[#allocation7 + $0x68] sm:$0xff]  ;;  %v76_v8 = vld [vmem:[#allocation7 + $0x18] sm:$0xff]  ;;  %s743_s3 = sshll.u32 %s1129_s2, 4  ;;  %s744_s3 = int_to_ptr.vmem [resolvable:$true] %s743_s3 }
  0x39   :  { %839 = vmatpush3.msra.mxu0 %v80_v1  ;;  %858 = vmatpush3.msra.mxu1 %v173_v4  ;;  %v170_v9 = vld [vmem:[#allocation7 + $0x60] sm:$0xff]  ;;  %v75_v10 = vld [vmem:[#allocation7 + $0x10] sm:$0xff]  ;;  %v169_v11 = vld [vmem:[#allocation7 + $0x58] sm:$0xff]  ;;  %s1069_s16 = scalar_lea.vmem %s744_s3, 384  ;;  %p1074_p7 = scmp.lt.s32.totalorder %s744_s3, %s744_s3 }
  0x3a   :  { %840 = vmatprep.subr.mxu0 %v1127_v0  ;;  %859 = vmatprep.subr.mxu1 %v1127_v0  ;;  %v74_v12 = vld [vmem:[#allocation7 + $0x8] sm:$0xff]  ;;  %v73_v13 = vld [vmem:[#allocation7] sm:$0xff]  ;;  %v72_v14 = vld [vmem:[#allocation2] sm:$0xff]  ;;  %p1070_p6 = scmp.ne.s32.totalorder %s744_s3, %s1069_s16  ;;  %p1075_p8 = scmp.lt.s32.totalorder %s1069_s16, %s1069_s16 }
  0x3b   :  { %841 = vmatpush3.msra.mxu0 %v79_v2  ;;  %860 = vmatpush3.msra.mxu1 %v172_v5  ;;  %v168_v15 = vld [vmem:[#allocation7 + $0x50] sm:$0xff]  ;;  %v167_v16 = vld [vmem:[#allocation7 + $0x48] sm:$0xff]  ;;  %v166_v17 = vld [vmem:[#allocation7 + $0x40] sm:$0xff] }
  0x3c   :  { %842 = vmatprep.subr.mxu0 %v1127_v0  ;;  %861 = vmatprep.subr.mxu1 %v1127_v0  ;;  %v266_v18 = vld [vmem:[#allocation7 + $0xb8] sm:$0xff]  ;;  %v265_v19 = vld [vmem:[#allocation7 + $0xb0] sm:$0xff]  ;;  %v264_v20 = vld [vmem:[#allocation7 + $0xa8] sm:$0xff]  ;;  %p1076_p9 = por %p1075_p8, %p1074_p7 }
  0x3d   :  { %843 = vmatpush3.msra.mxu0 %v78_v3  ;;  %862 = vmatpush3.msra.mxu1 %v171_v7  ;;  %v263_v21 = vld [vmem:[#allocation7 + $0xa0] sm:$0xff]  ;;  %v262_v22 = vld [vmem:[#allocation7 + $0x98] sm:$0xff]  ;;  %v355_v30 = vld [vmem:[#allocation7 + $0xf0] sm:$0xff] }
  0x3e   :  { %844 = vmatprep.subr.mxu0 %v1127_v0  ;;  %863 = vmatprep.subr.mxu1 %v1127_v0  ;;  %v761_v23 = vld [vmem:[#allocation8] ss:$0 sm:$0xff]  ;;  %v356_v28 = vld [vmem:[#allocation7 + $0xf8] sm:$0xff]  ;;  %v354_v31 = vld [vmem:[#allocation7 + $0xe8] sm:$0xff]  ;;  %p1077_p10 = pnand %p1076_p9, %p1070_p6 }
  0x3f   :  { %845 = vmatpush3.msra.mxu0 %v77_v6  ;;  %864 = vmatpush3.msra.mxu1 %v170_v9  ;;  %v353_v32 = vld [vmem:[#allocation7 + $0xe0] sm:$0xff]  ;;  %v352_v33 = vld [vmem:[#allocation7 + $0xd8] sm:$0xff]  ;;  %v261_v34 = vld [vmem:[#allocation7 + $0x90] sm:$0xff] }
  0x40   :  { %846 = vmatprep.subr.mxu0 %v1127_v0  ;;  %865 = vmatprep.subr.mxu1 %v1127_v0  ;;  %v351_v35 = vld [vmem:[#allocation7 + $0xd0] sm:$0xff]  ;;  %v260_v36 = vld [vmem:[#allocation7 + $0x88] sm:$0xff]  ;;  %v259_v38 = vld [vmem:[#allocation7 + $0x80] sm:$0xff] }
  0x41   :  { %847 = vmatpush3.msra.mxu0 %v76_v8  ;;  %866 = vmatpush3.msra.mxu1 %v169_v11  ;;  %v350_v37 = vld [vmem:[#allocation7 + $0xc8] sm:$0xff]  ;;  %v349_v39 = vld [vmem:[#allocation7 + $0xc0] sm:$0xff]  ;;  %v449_v46 = vld [vmem:[#allocation7 + $0x138] sm:$0xff] }
  0x42   :  { %848 = vmatprep.subr.mxu0 %v1127_v0  ;;  %867 = vmatprep.subr.mxu1 %v1127_v0  ;;  %v763_v40 = vld [vmem:[#allocation8 + $0x1] ss:$0 sm:$0xff]  ;;  %v448_v47 = vld [vmem:[#allocation7 + $0x130] sm:$0xff]  ;;  %v447_v48 = vld [vmem:[#allocation7 + $0x128] sm:$0xff] }
  0x43   :  { %849 = vmatpush3.msra.mxu0 %v75_v10  ;;  %868 = vmatpush3.msra.mxu1 %v168_v15  ;;  %v446_v49 = vld [vmem:[#allocation7 + $0x120] sm:$0xff]  ;;  %v445_v50 = vld [vmem:[#allocation7 + $0x118] sm:$0xff]  ;;  %v444_v51 = vld [vmem:[#allocation7 + $0x110] sm:$0xff] }
  0x44   :  { %850 = vmatprep.subr.mxu0 %v1127_v0  ;;  %869 = vmatprep.subr.mxu1 %v1127_v0  ;;  %v443_v52 = vld [vmem:[#allocation7 + $0x108] sm:$0xff]  ;;  %v442_v53 = vld [vmem:[#allocation7 + $0x100] sm:$0xff]  ;;  %v542_v54 = vld [vmem:[#allocation7 + $0x178] sm:$0xff] }
  0x45   :  { %851 = vmatpush3.msra.mxu0 %v74_v12  ;;  %870 = vmatpush3.msra.mxu1 %v167_v16  ;;  %v541_v55 = vld [vmem:[#allocation7 + $0x170] sm:$0xff]  ;;  %v540_v56 = vld [vmem:[#allocation7 + $0x168] sm:$0xff]  ;;  %v539_v57 = vld [vmem:[#allocation7 + $0x160] sm:$0xff] }
  0x46   :  { %852 = vmatprep.subr.mxu0 %v1127_v0  ;;  %871 = vmatprep.subr.mxu1 %v1127_v0  ;;  %v538_v58 = vld [vmem:[#allocation7 + $0x158] sm:$0xff]  ;;  %v765_v59 = vld [vmem:[#allocation8 + $0x2] ss:$0 sm:$0xff]  ;;  %v767_v60 = vld [vmem:[#allocation8 + $0x3] ss:$0 sm:$0xff] }
  0x47   :  { %853 = vmatpush3.msra.mxu0 %v73_v13  ;;  %872 = vmatpush3.msra.mxu1 %v166_v17  ;;  %v435_v6 = vld [vmem:[#allocation5] sm:$0xff]  ;;  %v537_v10 = vld [vmem:[#allocation7 + $0x150] sm:$0xff]  ;;  %v536_v11 = vld [vmem:[#allocation7 + $0x148] sm:$0xff] }
  0x48   :  { %855 = vmatmul.mubr.msk.f32.vlgmr.msra.gmra.mxu0 %vm88_vm1, %v72_v14  ;;  %876 = vmatprep.subr.mxu0 %v1127_v0  ;;  %v535_v12 = vld [vmem:[#allocation7 + $0x140] sm:$0xff]  ;;  %v635_v13 = vld [vmem:[#allocation7 + $0x1b8] sm:$0xff]  ;;  %v634_v14 = vld [vmem:[#allocation7 + $0x1b0] sm:$0xff] }
  0x49   :  { %892 = vmatprep.mubr.msk.f32.mxu0 %vm1128_vm0, %v1127_v0  ;;  %895 = vmatprep.subr.mxu1 %v1127_v0  ;;  %v633_v15 = vld [vmem:[#allocation7 + $0x1a8] sm:$0xff]  ;;  %v632_v16 = vld [vmem:[#allocation7 + $0x1a0] sm:$0xff]  ;;  %v631_v17 = vld [vmem:[#allocation7 + $0x198] sm:$0xff] }
  0x4a   :  { %877 = vmatpush3.msra.mxu0 %v266_v18  ;;  %v769_v18 = vld [vmem:[#allocation8 + $0x4] ss:$0 sm:$0xff] }
  0x4b   :  { %878 = vmatprep.subr.mxu0 %v1127_v0 }
  0x4c   :  { %879 = vmatpush3.msra.mxu0 %v265_v19 }
  0x4d   :  { %880 = vmatprep.subr.mxu0 %v1127_v0 }
  0x4e   :  { %881 = vmatpush3.msra.mxu0 %v264_v20 }
  0x4f   :  { %882 = vmatprep.subr.mxu0 %v1127_v0 }
  0x50   :  { %883 = vmatpush3.msra.mxu0 %v263_v21 }
  0x51   :  { %884 = vmatprep.subr.mxu0 %v1127_v0 }
  0x52   :  { %885 = vmatpush3.msra.mxu0 %v262_v22 }
  0x53   :  { %886 = vmatprep.subr.mxu0 %v1127_v0 }
  0x54   :  { %887 = vmatpush3.msra.mxu0 %v261_v34 }
  0x55   :  { %888 = vmatprep.subr.mxu0 %v1127_v0 }
  0x56   :  { %889 = vmatpush3.msra.mxu0 %v260_v36 }
  0x57   :  { %890 = vmatprep.subr.mxu0 %v1127_v0 }
  0x58   :  { %891 = vmatpush3.msra.mxu0 %v259_v38 }
  0x59   :  { %914 = vmatprep.subr.mxu0 %v1127_v0 }
 0x108   :  { %v158_v24 = vpop.f32.mrf.mxu0 }
 0x109   :  { %v159_v25 = vadd.f32 %v761_v23, %v158_v24  ;;  %v630_v24 = vld [vmem:[#allocation7 + $0x190] sm:$0xff] }
 0x10a   :  { %v856_v26 = vpop.f32.mrf.mxu0 }
 0x10b   :  { %vm162_vm2 = vcmp.gt.f32.partialorder %v159_v25, 0.0  ;;  %v163_v27 = vmul.f32 0.3, %v159_v25  ;;  %v628_v26 = vld [vmem:[#allocation7 + $0x180] sm:$0xff] }
 0x10d   :  { %v164_v29 = vsel %vm162_vm2, %v159_v25, %v163_v27  ;;  %v629_v25 = vld [vmem:[#allocation7 + $0x188] sm:$0xff]  ;;  %v771_v27 = vld [vmem:[#allocation8 + $0x5] ss:$0 sm:$0xff] }
 0x10e   :  { %874 = vmatmul.mubr.msk.f32.vlgmr.msra.gmra.mxu1 %vm88_vm1, %v164_v29 }
 0x10f   :  { %896 = vmatpush3.msra.mxu1 %v356_v28  ;;  %911 = vmatprep.mubr.msk.f32.mxu1 %vm1128_vm0, %v1127_v0 }
 0x110   :  { %897 = vmatprep.subr.mxu1 %v1127_v0 }
 0x111   :  { %898 = vmatpush3.msra.mxu1 %v355_v30 }
 0x112   :  { %899 = vmatprep.subr.mxu1 %v1127_v0 }
 0x113   :  { %900 = vmatpush3.msra.mxu1 %v354_v31 }
 0x114   :  { %901 = vmatprep.subr.mxu1 %v1127_v0 }
 0x115   :  { %902 = vmatpush3.msra.mxu1 %v353_v32 }
 0x116   :  { %903 = vmatprep.subr.mxu1 %v1127_v0 }
 0x117   :  { %904 = vmatpush3.msra.mxu1 %v352_v33 }
 0x118   :  { %905 = vmatprep.subr.mxu1 %v1127_v0 }
 0x119   :  { %906 = vmatpush3.msra.mxu1 %v351_v35 }
 0x11a   :  { %907 = vmatprep.subr.mxu1 %v1127_v0 }
 0x11b   :  { %908 = vmatpush3.msra.mxu1 %v350_v37 }
 0x11c   :  { %909 = vmatprep.subr.mxu1 %v1127_v0 }
 0x11d   :  { %910 = vmatpush3.msra.mxu1 %v349_v39 }
 0x11e   :  { %933 = vmatprep.subr.mxu1 %v1127_v0 }
 0x1ce   :  { %v251_v41 = vpop.f32.mrf.mxu1 }
 0x1cf   :  { %v252_v42 = vadd.f32 %v763_v40, %v251_v41 }
 0x1d0   :  { %v875_v43 = vpop.f32.mrf.mxu1 }
 0x1d1   :  { %vm255_vm3 = vcmp.gt.f32.partialorder %v252_v42, 0.0  ;;  %v256_v44 = vmul.f32 0.3, %v252_v42 }
 0x1d3   :  { %v257_v45 = vsel %vm255_vm3, %v252_v42, %v256_v44 }
 0x1d4   :  { %893 = vmatmul.mubr.msk.f32.vlgmr.msra.gmra.mxu0 %vm88_vm1, %v257_v45  ;;  %912 = vmatmul.mubr.msk.f32.vlgmr.msra.gmra.mxu1 %vm88_vm1, %v257_v45 }
 0x1d5   :  { %930 = vmatprep.mubr.msk.f32.mxu0 %vm1128_vm0, %v1127_v0  ;;  %949 = vmatprep.mubr.msk.f32.mxu1 %vm1128_vm0, %v1127_v0 }
 0x1d6   :  { %915 = vmatpush3.msra.mxu0 %v449_v46  ;;  %934 = vmatpush3.msra.mxu1 %v542_v54 }
 0x1d7   :  { %916 = vmatprep.subr.mxu0 %v1127_v0  ;;  %935 = vmatprep.subr.mxu1 %v1127_v0 }
 0x1d8   :  { %917 = vmatpush3.msra.mxu0 %v448_v47  ;;  %936 = vmatpush3.msra.mxu1 %v541_v55 }
 0x1d9   :  { %918 = vmatprep.subr.mxu0 %v1127_v0  ;;  %937 = vmatprep.subr.mxu1 %v1127_v0 }
 0x1da   :  { %919 = vmatpush3.msra.mxu0 %v447_v48  ;;  %938 = vmatpush3.msra.mxu1 %v540_v56 }
 0x1db   :  { %920 = vmatprep.subr.mxu0 %v1127_v0  ;;  %939 = vmatprep.subr.mxu1 %v1127_v0 }
 0x1dc   :  { %921 = vmatpush3.msra.mxu0 %v446_v49  ;;  %940 = vmatpush3.msra.mxu1 %v539_v57 }
 0x1dd   :  { %922 = vmatprep.subr.mxu0 %v1127_v0  ;;  %941 = vmatprep.subr.mxu1 %v1127_v0 }
 0x1de   :  { %923 = vmatpush3.msra.mxu0 %v445_v50  ;;  %942 = vmatpush3.msra.mxu1 %v538_v58 }
 0x1df   :  { %924 = vmatprep.subr.mxu0 %v1127_v0  ;;  %943 = vmatprep.subr.mxu1 %v1127_v0 }
 0x1e0   :  { %925 = vmatpush3.msra.mxu0 %v444_v51  ;;  %944 = vmatpush3.msra.mxu1 %v537_v10 }
 0x1e1   :  { %926 = vmatprep.subr.mxu0 %v1127_v0  ;;  %945 = vmatprep.subr.mxu1 %v1127_v0 }
 0x1e2   :  { %927 = vmatpush3.msra.mxu0 %v443_v52  ;;  %946 = vmatpush3.msra.mxu1 %v536_v11 }
 0x1e3   :  { %928 = vmatprep.subr.mxu0 %v1127_v0  ;;  %947 = vmatprep.subr.mxu1 %v1127_v0 }
 0x1e4   :  { %929 = vmatpush3.msra.mxu0 %v442_v53  ;;  %948 = vmatpush3.msra.mxu1 %v535_v12 }
 0x1e5   :  { %952 = vmatprep.subr.mxu0 %v1127_v0 }
 0x294   :  { %v344_v61 = vpop.f32.mrf.mxu0  ;;  %v431_v62 = vpop.f32.mrf.mxu1 }
 0x295   :  { %v345_v63 = vadd.f32 %v765_v59, %v344_v61  ;;  %v432_v1 = vadd.f32 %v767_v60, %v431_v62 }
 0x296   :  { %v894_v2 = vpop.f32.mrf.mxu0  ;;  %v913_v3 = vpop.f32.mrf.mxu1 }
 0x297   :  { %723 = vst.msk [vmem:[#allocation11] sm:$0xff] %vm88_vm1, %v345_v63  ;;  %v436_v4 = vmul.f32 0.5, %v432_v1  ;;  %725 = vst.msk [vmem:[#allocation11 + $0x8] sm:$0xff] %vm88_vm1, %v432_v1 }
 0x299   :  { %v437_v5 = vmul.f32 1.442695, %v436_v4 }
 0x29b   :  { %983 = vpow2.f32 %v437_v5 }
 0x2a8   :  { %v984_v7 = vpop.eup %983 }
 0x2a9   :  { %v439_v8 = vmul.f32 %v984_v7, %v435_v6 }
 0x2ab   :  { %v440_v9 = vadd.f32 %v439_v8, %v345_v63 }
 0x2ad   :  { %931 = vmatmul.mubr.msk.f32.vlgmr.msra.gmra.mxu0 %vm88_vm1, %v440_v9  ;;  %727 = vst.msk [vmem:[#allocation11 + $0x10] sm:$0xff] %vm88_vm1, %v440_v9 }
 0x2ae   :  { %968 = vmatprep.mubr.msk.f32.mxu0 %vm1128_vm0, %v1127_v0  ;;  %953 = vmatpush3.msra.mxu0 %v635_v13 }
 0x2af   :  { %954 = vmatprep.subr.mxu0 %v1127_v0 }
 0x2b0   :  { %955 = vmatpush3.msra.mxu0 %v634_v14 }
 0x2b1   :  { %956 = vmatprep.subr.mxu0 %v1127_v0 }
 0x2b2   :  { %957 = vmatpush3.msra.mxu0 %v633_v15 }
 0x2b3   :  { %958 = vmatprep.subr.mxu0 %v1127_v0 }
 0x2b4   :  { %959 = vmatpush3.msra.mxu0 %v632_v16 }
 0x2b5   :  { %960 = vmatprep.subr.mxu0 %v1127_v0 }
 0x2b6   :  { %961 = vmatpush3.msra.mxu0 %v631_v17 }
 0x2b7   :  { %962 = vmatprep.subr.mxu0 %v1127_v0 }
 0x2b8   :  { %963 = vmatpush3.msra.mxu0 %v630_v24 }
 0x2b9   :  { %964 = vmatprep.subr.mxu0 %v1127_v0 }
 0x2ba   :  { %965 = vmatpush3.msra.mxu0 %v629_v25 }
 0x2bb   :  { %966 = vmatprep.subr.mxu0 %v1127_v0 }
 0x2bc   :  { %967 = vmatpush3.msra.mxu0 %v628_v26 }
 0x36d   :  { %v527_v19 = vpop.f32.mrf.mxu0 }
 0x36e   :  { %v528_v20 = vadd.f32 %v769_v18, %v527_v19 }
 0x36f   :  { %v932_v21 = vpop.f32.mrf.mxu0 }
 0x370   :  { %vm531_vm4 = vcmp.gt.f32.partialorder %v528_v20, 0.0  ;;  %v532_v22 = vmul.f32 0.3, %v528_v20 }
 0x372   :  { %v533_v23 = vsel %vm531_vm4, %v528_v20, %v532_v22 }
 0x373   :  { %950 = vmatmul.mubr.msk.f32.vlgmr.msra.gmra.mxu1 %vm88_vm1, %v533_v23 }
 0x433   :  { %v620_v28 = vpop.f32.mrf.mxu1 }
 0x434   :  { %v621_v29 = vadd.f32 %v771_v27, %v620_v28 }
 0x435   :  { %v951_v30 = vpop.f32.mrf.mxu1 }
 0x436   :  { %vm624_vm5 = vcmp.gt.f32.partialorder %v621_v29, 0.0  ;;  %v625_v31 = vmul.f32 0.3, %v621_v29 }
 0x438   :  { %v626_v32 = vsel %vm624_vm5, %v621_v29, %v625_v31 }
 0x439   :  { %969 = vmatmul.mubr.msk.f32.vlgmr.msra.gmra.mxu0 %vm88_vm1, %v626_v32 }
 0x43a   :  { %1080 = shalt.err (!%p1077_p10)
}
 0x43b   :  { %749 = dma.vmem_to_hbm [thread:$0]  %s744_s3, 384, %s1271_s5, [#allocation12], %s1122_s1, %s1122_s1, %s1123_s6   ;;  %v773_v0 = vld [vmem:[#allocation8 + $0x6] ss:$0 sm:$0xff] }
 0x43c   :  { %s1130_s19 = smov [#allocation10]  }
 0x43d   :  { %s734_s20 = sshll.u32 %s1130_s19, 4  ;;  %s735_s20 = int_to_ptr.vmem [resolvable:$true] %s734_s20 }
 0x43e   :  { %s1089_s21 = scalar_lea.vmem %s735_s20, 128  ;;  %p1094_p12 = scmp.lt.s32.totalorder %s735_s20, %s735_s20 }
 0x43f   :  { %p1090_p11 = scmp.ne.s32.totalorder %s735_s20, %s1089_s21  ;;  %p1095_p13 = scmp.lt.s32.totalorder %s1089_s21, %s1089_s21 }
 0x441   :  { %p1096_p0 = por %p1095_p13, %p1094_p12 }
 0x443   :  { %p1097_p1 = pnand %p1096_p0, %p1090_p11 }
 0x4f9   :  { %v713_v33 = vpop.f32.mrf.mxu0 }
 0x4fa   :  { %v714_v34 = vadd.f32 %v773_v0, %v713_v33 }
 0x4fb   :  { %v970_v35 = vpop.f32.mrf.mxu0 }
 0x4fc   :  { %v717_v36 = vsub.f32 0.0, %v714_v34 }
 0x4fe   :  { %v718_v37 = vmul.f32 1.442695, %v717_v36 }
 0x500   :  { %985 = vpow2.f32 %v718_v37 }
 0x50d   :  { %v986_v38 = vpop.eup %985 }
 0x50e   :  { %v720_v39 = vadd.f32 1.0, %v986_v38 }
 0x510   :  { %987 = vrcp.f32 %v720_v39 }
 0x51d   :  { %v988_v40 = vpop.eup %987 }
 0x51e   :  { %722 = vst.msk [vmem:[#allocation10] sm:$0xff] %vm88_vm1, %v988_v40 }
 0x51f   :  { %1100 = shalt.err (!%p1097_p1)
}
 0x520   :  { %737 = dma.vmem_to_hbm [thread:$0]  %s735_s20, 128, %s1270_s4, [#allocation4]  }
 0x521   :  { %1115 = dma.done.wait [#allocation4], 128  }
 0x522   :  { %1116 = vsyncadd [#allocation4], 4294967168 }
 0x523   :  { %1117 = dma.done.wait [#allocation12], 384  }
 0x524   :  { %1118 = vsyncadd [#allocation12], 4294966912 }
 0x525   :  { %756 = vsyncpa [#allocation3], 1 }
 0x526   :  { %757 = vsyncpa [#allocation6], 1 }
 0x527   :  { %758 = vsyncpa [#allocation9], 1 }
 0x528   :  { %759 = vsyncpa [#allocation4], 1 }
 0x529   :  { %760 = vsyncpa [#allocation12], 1 }

</bundles_post_ra>
